<compile_context>
chip_gen: v7x
topology: tpu7x:2x2x1
jax: 0.10.0
libtpu: 0.0.40
codegen_flags: <defaults>
</compile_context>

<pallas_src>
import functools

import jax
import jax.numpy as jnp
from jax import lax
from jax.experimental import pallas as pl
from jax.experimental.pallas import tpu as pltpu


def _distmult_kernel(h_ref, w_ref, out_ref):
    # h_ref:   (B, D)   bf16 block = emb_e[e1] * emb_rel[rel] (resident)
    # w_ref:   (TN, D)  bf16 tile of the (padded) entity embedding table
    # out_ref: (B, TN)  f32 tile of the sigmoid score matrix
    s = lax.dot_general(
        h_ref[...], w_ref[...],
        dimension_numbers=(((1,), (1,)), ((), ())),
        preferred_element_type=jnp.float32)                    # MXU, f32 acc
    out_ref[...] = jax.nn.sigmoid(s).astype(out_ref.dtype)     # EUP + VPU


def choose_tile_n(num_entities, target=8192):
    """Pick a lane-aligned entity-tile size: big enough to amortize per-step
    pipeline overhead (~0.35us), small enough to keep >=2 grid steps so the
    'parallel' grid axis can feed both v7x TensorCores."""
    half = -(-num_entities // 2)                       # ceil(E/2)
    tile = min(target, ((half + 127) // 128) * 128)    # 128-lane multiple
    return max(128, tile)


def prepare_distmult_params(emb_e_weight, emb_rel_weight, tile_n):
    """One-time parameter prep, hoisted out of the per-call path:
    f32 -> bf16 cast of both tables and zero-row padding of the entity table
    to a multiple of tile_n (so no trailing entities are dropped)."""
    E, _ = emb_e_weight.shape
    e_pad = pl.cdiv(E, tile_n) * tile_n
    w_e = emb_e_weight.astype(jnp.bfloat16)
    if e_pad != E:
        w_e = jnp.pad(w_e, ((0, e_pad - E), (0, 0)))
    w_rel = emb_rel_weight.astype(jnp.bfloat16)
    return w_e, w_rel


@functools.partial(jax.jit, static_argnames=("num_entities", "tile_n"))
def distmult_forward(e1, rel, w_e_padded, w_rel, *, num_entities, tile_n):
    """DistMult scoring forward.

    e1, rel:     int32 (B,) entity / relation indices
    w_e_padded:  (E_pad, D) bfloat16 pre-padded entity table (from
                 prepare_distmult_params; E_pad is a multiple of tile_n)
    w_rel:       (num_relations, D) bfloat16 relation table
    returns:     (B, num_entities) float32 sigmoid scores
    """
    B = e1.shape[0]
    e_pad, D = w_e_padded.shape
    n_tiles = e_pad // tile_n

    # Embedding lookups (tiny B-row gathers) + the elementwise product, done
    # once here so the kernel streams a single resident (B, D) block.
    h = jnp.take(w_e_padded, e1, axis=0) * jnp.take(w_rel, rel, axis=0)
    h = h.astype(jnp.bfloat16)

    # VMEM budget: double-buffered bf16 weight tile + resident bf16 h block +
    # f32 output tile, 2x headroom, clamped to 48 MiB (safe on v5e/v6e/v7x).
    # NOTE: if B ever grows beyond ~128, add a second 'parallel' grid axis
    # over the batch instead of keeping the whole batch in one block.
    vmem_needed = (2 * tile_n * D * 2          # weight tile, double-buffered
                   + 2 * B * D * 2             # h block
                   + 2 * B * tile_n * 4)       # output tile
    vmem_limit = int(min(max(2 * vmem_needed, 4 * 1024 * 1024),
                         48 * 1024 * 1024))

    cost = pl.CostEstimate(
        flops=2 * B * e_pad * D,
        transcendentals=B * e_pad,
        bytes_accessed=e_pad * D * 2 + B * D * 2 + B * e_pad * 4,
    )

    scores = pl.pallas_call(
        _distmult_kernel,
        out_shape=jax.ShapeDtypeStruct((B, e_pad), jnp.float32),
        grid_spec=pltpu.PrefetchScalarGridSpec(
            num_scalar_prefetch=0,
            grid=(n_tiles,),
            in_specs=[
                pl.BlockSpec((B, D), lambda j: (0, 0)),        # h (resident)
                pl.BlockSpec((tile_n, D), lambda j: (j, 0)),   # entity tile
            ],
            out_specs=pl.BlockSpec((B, tile_n), lambda j: (0, j)),
        ),
        compiler_params=pltpu.CompilerParams(
            dimension_semantics=("parallel",),
            vmem_limit_bytes=vmem_limit),
        cost_estimate=cost,
    )(h, w_e_padded)

    # Padded entity columns hold sigmoid(0)=0.5; always slice them off here.
    if e_pad != num_entities:
        scores = scores[:, :num_entities]
    return scores


def _xavier_normal(key, shape):
    fan_out, fan_in = shape
    std = (2.0 / (fan_in + fan_out)) ** 0.5
    return std * jax.random.normal(key, shape, dtype=jnp.float32)


if __name__ == "__main__":
    # Small shapes consistent with the module; E deliberately NOT tile-aligned
    # to exercise the padding path.
    #   Config.embedding_dim = 128, num_entities = 300, num_relations = 32, batch = 8
    num_entities = 300
    num_relations = 32
    embedding_dim = 128
    batch = 8

    key = jax.random.PRNGKey(0)
    k_e, k_r, k_i1, k_i2 = jax.random.split(key, 4)

    emb_e = _xavier_normal(k_e, (num_entities, embedding_dim))
    emb_rel = _xavier_normal(k_r, (num_relations, embedding_dim))
    # padding_idx=0 -> row 0 is zeros in both tables.
    emb_e = emb_e.at[0].set(0.0)
    emb_rel = emb_rel.at[0].set(0.0)

    e1 = jax.random.randint(k_i1, (batch,), 0, num_entities, dtype=jnp.int32)
    rel = jax.random.randint(k_i2, (batch,), 0, num_relations, dtype=jnp.int32)

    # One-time prep (hoisted off the per-call path).
    tile_n = choose_tile_n(num_entities)                 # -> 256 here, 2 tiles
    w_e_padded, w_rel = prepare_distmult_params(emb_e, emb_rel, tile_n)
    w_e_padded = jax.block_until_ready(w_e_padded)

    pred = distmult_forward(e1, rel, w_e_padded, w_rel,
                            num_entities=num_entities, tile_n=tile_n)
    jax.block_until_ready(pred)
    assert pred.shape == (batch, num_entities)

    # Cross-check against a bf16-matched pure-JAX reference (tight tolerance).
    w_bf = emb_e.astype(jnp.bfloat16)
    r_bf = emb_rel.astype(jnp.bfloat16)
    h_ref = jnp.take(w_bf, e1, axis=0) * jnp.take(r_bf, rel, axis=0)
    ref_bf = jax.nn.sigmoid(
        lax.dot_general(h_ref, w_bf,
                        dimension_numbers=(((1,), (1,)), ((), ())),
                        preferred_element_type=jnp.float32))
    assert jnp.allclose(pred, ref_bf, atol=1e-4, rtol=1e-4)

    # And against the full-f32 reference (loose tolerance, bf16 streaming).
    ref_f32 = jax.nn.sigmoid(
        (jnp.take(emb_e, e1, axis=0) * jnp.take(emb_rel, rel, axis=0)) @ emb_e.T)
    assert jnp.allclose(pred, ref_f32, atol=3e-2, rtol=3e-2)

    print("KERNEL_OK")
</pallas_src>

<mosaic_0001>
module attributes {stable_mosaic.version = 11 : i64} {
  func.func @_distmult_kernel(%arg0: i32, %arg1: memref<8x128xbf16, #tpu.memory_space<vmem>>, %arg2: memref<256x128xbf16, #tpu.memory_space<vmem>>, %arg3: memref<8x256xf32, #tpu.memory_space<vmem>>) attributes {dimension_semantics = [#tpu.dimension_semantics<parallel>], iteration_bounds = array<i64: 2>, scalar_prefetch = 0 : i64, scratch_operands = 0 : i64, tpu.core_type = #tpu.core_type<tc>, window_params = [{pipeline_mode = #tpu.pipeline_mode<synchronous>, transform_indices = @transform_0, window_bounds = array<i64: 8, 128>}, {transform_indices = @transform_1, window_bounds = array<i64: 256, 128>}, {transform_indices = @transform_2, window_bounds = array<i64: 8, 256>}]} {
    %c0 = arith.constant 0 : index
    %c0_0 = arith.constant 0 : index
    %0 = vector.load %arg1[%c0, %c0_0] : memref<8x128xbf16, #tpu.memory_space<vmem>>, vector<8x128xbf16>
    %c0_1 = arith.constant 0 : index
    %c0_2 = arith.constant 0 : index
    %1 = vector.load %arg2[%c0_1, %c0_2] : memref<256x128xbf16, #tpu.memory_space<vmem>>, vector<256x128xbf16>
    %cst = arith.constant dense<0.000000e+00> : vector<8x256xf32>
    %2 = tpu.matmul %0, %1, %cst {dimension_numbers = #tpu.dot_dimension_numbers<[1], [1], [0], [0], [0, 0, 1, 0], [], []>} : vector<8x128xbf16>, vector<256x128xbf16>, vector<8x256xf32> -> vector<8x256xf32>
    %3 = arith.negf %2 : vector<8x256xf32>
    %4 = math.exp %3 : vector<8x256xf32>
    %cst_3 = arith.constant 1.000000e+00 : f32
    %5 = vector.broadcast %cst_3 : f32 to vector<8x256xf32>
    %6 = arith.addf %5, %4 : vector<8x256xf32>
    %7 = arith.divf %5, %6 : vector<8x256xf32>
    %c0_4 = arith.constant 0 : index
    %c0_5 = arith.constant 0 : index
    %8 = vector.load %arg3[%c0_4, %c0_5] : memref<8x256xf32, #tpu.memory_space<vmem>>, vector<8x256xf32>
    tpu.vector_store %arg3[%c0_4, %c0_5], %7 {strides = array<i32>} : memref<8x256xf32, #tpu.memory_space<vmem>>, vector<8x256xf32>,
    return
  }
  func.func @transform_0(%arg0: i32) -> (i32, i32) {
    %c0_i32 = arith.constant 0 : i32
    %c0_i32_0 = arith.constant 0 : i32
    %c0_i32_1 = arith.constant 0 : i32
    return %c0_i32, %c0_i32_0 : i32, i32
  }
  func.func @transform_1(%arg0: i32) -> (i32, i32) {
    %c0_i32 = arith.constant 0 : i32
    %c0_i32_0 = arith.constant 0 : i32
    return %arg0, %c0_i32 : i32, i32
  }
  func.func @transform_2(%arg0: i32) -> (i32, i32) {
    %c0_i32 = arith.constant 0 : i32
    %c0_i32_0 = arith.constant 0 : i32
    return %c0_i32, %arg0 : i32, i32
  }
}

</mosaic_0001>

<bundles_post_ra>
// kernel: distmult_forward.1
= control target key start
LH: loop header
LB: loop body
LE: loop exit
PB: predicated region body
PF: predicated region fallthrough
CT: control target
= control target key end

     0   :  { %7 = vsyncpa [#allocation3], 0  ;;  %s745_s0 = inlined_call_operand.vmem [shape: bf16[8,128], index: 0, kind: input, shape index: {}]   ;;  %s746_s1 = inlined_call_operand.hbm [shape: bf16[512,128], index: 1, kind: input, shape index: {}]   ;;  %s747_s2 = inlined_call_operand.vmem [shape: f32[8,512], index: 2, kind: output, shape index: {}]  }
   0x1   :  { %9 = vsyncpa [#allocation3 + $0x1], 0  ;;  %s617_s9 = smov 0   ;;  %s619_s10 = smov 0  }
   0x2   :  { %s621_s11 = smov 0   ;;  %s623_s12 = smov 0  }
   0x3 LB: > { %s418_s13 = sadd.s32 4294967295, %s597_s12   ;;  %s637_s14 = sadd.s32 1, %s597_s12   ;;  %s597_s12 = sphi %s623_s12, %s754_s12   ;;  %s593_s11 = sphi %s621_s11, %s753_s11   ;;  %s589_s10 = sphi %s619_s10, %s752_s10   ;;  %s585_s9 = sphi %s617_s9, %s751_s9  }
   0x4   : > { %s40_s15 = ssub.s32 %s597_s12, %s637_s14  ;;  %s43_s16 = sadd.s32 1, %s593_s11 }
   0x5   : > { %p41_p0 = scmp.eq.s32.totalorder %s40_s15, 0  ;;  %p50_p1 = scmp.ne.s32.totalorder %s593_s11, %s589_s10 }
   0x6   : > { %p51_p2 = scmp.eq.s32.totalorder %s597_s12, 0  ;;  %p56_p3 = scmp.ne.s32.totalorder %s589_s10, %s585_s9 }
   0x7   : > { %s647_s17 = scalar_select %p41_p0, %s593_s11, %s43_s16  }
   0x8   : > { %p52_p4 = por %p51_p2, %p50_p1  ;;  %p57_p5 = scmp.eq.s32.totalorder %s418_s13, 0 }
   0x9   : > { %p474_p6 = scmp.lt.s32.totalorder %s597_s12, 2  ;;  %s109_s19 = sand.u32 1, %s593_s11  }
   0xa   : > { %p652_p7 = por %p57_p5, %p56_p3  ;;  %s422_s20 = sshll.u32 %s109_s19, 7 }
   0xb   : > { %s449_s21 = sshll.u32 %s597_s12, 11  ;;  %s113_s25 = scalar_lea.vmem [#allocation2], %s422_s20 }
   0xc   : > { %s661_s24 = scalar_lea.hbm %s746_s1, %s449_s21  ;;  %s120_s26 = sshll.u32 %s113_s25, 4  ;;  %s663_s26 = int_to_ptr.vmem [resolvable:$true] %s120_s26 }
   0xd   : > { %p665_p8 = pnand %p474_p6, %p52_p4  ;;  %s670_s28 = scalar_lea.sflag [#allocation3], %s109_s19 }
   0xe   : > { %s533_s29 = scalar_lea.hbm %s661_s24, 2048  ;;  %s538_s4 = scalar_lea.hbm %s746_s1, 4096 }
   0xf   : > { %p534_p10 = scmp.ne.s32.totalorder %s661_s24, %s533_s29  ;;  %p535_p11 = pneg %p665_p8 }
  0x10   : > { %p539_p0 = scmp.lt.u32.totalorder %s661_s24, %s746_s1  ;;  %p540_p1 = scmp.lt.u32.totalorder %s538_s4, %s533_s29 }
  0x11   : > { %p536_p12 = pnand %p535_p11, %p534_p10  ;;  %p542_p3 = scmp.lt.u32.totalorder %s533_s29, %s661_s24 }
  0x12   : > { %p541_p2 = por %p540_p1, %p539_p0 }
  0x13   : > { %p537_p13 = pneg %p536_p12 }
  0x14   : > { %p543_p4 = por %p542_p3, %p541_p2 }
  0x16   : > { %p544_p5 = pnand %p543_p4, %p537_p13 }
  0x18   : > { %547 = shalt.err (!%p544_p5)
}
  0x19   : > { %s548_s7 = scalar_lea.vmem %s663_s26, 2048  ;;  %s599_s8 = smov [#allocation2]  }
  0x1a   : > { %p549_p6 = scmp.ne.s32.totalorder %s663_s26, %s548_s7  ;;  %s553_s9 = sshll.u32 %s599_s8, 4  ;;  %s554_s9 = int_to_ptr.vmem [resolvable:$false] %s553_s9 }
  0x1b   : > { %s555_s15 = scalar_lea.vmem %s554_s9, 4096  ;;  %p556_p9 = scmp.lt.s32.totalorder %s663_s26, %s554_s9 }
  0x1c   : > { %p551_p10 = pnand %p549_p6, %p535_p11  ;;  %p557_p0 = scmp.lt.s32.totalorder %s555_s15, %s548_s7 }
  0x1e   : > { %p552_p12 = pneg %p551_p10  ;;  %p558_p1 = por %p557_p0, %p556_p9 }
  0x20   : > { %p559_p2 = pnand %p558_p1, %p552_p12 }
  0x22   : > { %562 = shalt.err (!%p559_p2)
}
  0x23   : > { %s600_s16 = smov 64   ;;  %s601_s19 = smov 4  }
  0x24   : > { %473 = dma.hbm_to_vmem [thread:$0]  (!%p665_p8), %s661_s24, 2048, %s663_s26, %s670_s28, %s600_s16, %s600_s16, %s601_s19  }
  0x25   : > { %p128_p11 = scmp.lt.s32.totalorder %s597_s12, 3  ;;  %p750_p13 = scmp.ge.s32.totalorder %s597_s12, 1 }
  0x27   : > { %p129_p3 = pnand %p750_p13, %p128_p11 }
  0x28   : > { %s134_s20 = sand.u32 (!%p129_p3), 1, %s589_s10  }
  0x29   : > { %132 = sbr.rel (%p129_p3) target bundleno = 354 (0x162), region = 28  ;;  %s426_s21 = sshll.u32 (!%p129_p3), %s134_s20, 7 }
  0x2a   : > { %s135_s22 = scalar_lea.sflag (!%p129_p3), [#allocation3], %s134_s20  ;;  %s702_s23 = scalar_lea.vmem (!%p129_p3), [#allocation2], %s426_s21 }
  0x30   : > { %580 = dma.done.wait (%p652_p7), %s135_s22, 2048  }
  0x31   : > { %582 = vsyncadd (%p652_p7), %s135_s22, 4294965248  ;;  %v509_v0 = vld [vmem:[%s702_s23 + $0x40] sm:$0xff]   ;;  %v511_v2 = vld [vmem:[%s702_s23 + $0x48] sm:$0xff]   ;;  %s427_s25 = sshll.u32 %s418_s13, 1 }
  0x32   : > { %v510_v1 = vld [vmem:[%s702_s23] sm:$0xff]   ;;  %450 = vmatprep.subr.bf16.mxu0 %v509_v0  ;;  %v512_v3 = vld [vmem:[%s702_s23 + $0x8] sm:$0xff]   ;;  %v513_v4 = vld [vmem:[%s702_s23 + $0x50] sm:$0xff]   ;;  %p161_p7 = scmp.lt.s32.totalorder %s427_s25, 3 }
  0x33   : > { %451 = vmatpush3.bf16.xpose.msra.mxu0 %v510_v1  ;;  %v514_v5 = vld [vmem:[%s702_s23 + $0x10] sm:$0xff]   ;;  %v515_v6 = vld [vmem:[%s702_s23 + $0x58] sm:$0xff]   ;;  %v167_v7 = vld [vmem:[%s745_s0] sm:$0xf] }
  0x34   : > { %452 = vmatprep.subr.bf16.mxu0 %v511_v2  ;;  %466 = vmatprep.mubr.bf16.mxu0 %v167_v7  ;;  %v516_v8 = vld [vmem:[%s702_s23 + $0x18] sm:$0xff]   ;;  %v517_v9 = vld [vmem:[%s702_s23 + $0x60] sm:$0xff]   ;;  %v519_v11 = vld [vmem:[%s702_s23 + $0x68] sm:$0xff]   ;;  %s756_s25 = smov (!%p161_p7, %s427_s25), 3 }
  0x35   : > { %v518_v10 = vld [vmem:[%s702_s23 + $0x20] sm:$0xff]   ;;  %v520_v12 = vld [vmem:[%s702_s23 + $0x28] sm:$0xff]   ;;  %v521_v13 = vld [vmem:[%s702_s23 + $0x70] sm:$0xff]   ;;  %s428_s26 = sshll.u32 %s756_s25, 3 }
  0x36   : > { %v522_v14 = vld [vmem:[%s702_s23 + $0x30] sm:$0xff]   ;;  %v523_v15 = vld [vmem:[%s702_s23 + $0x78] sm:$0xff]   ;;  %s164_s29 = scalar_lea.vmem %s747_s2, %s428_s26 }
  0x37   : > { %v524_v16 = vld [vmem:[%s702_s23 + $0x38] sm:$0xff]  }
  0x3b   : > { %453 = vmatpush3.bf16.xpose.msra.mxu0 %v512_v3 }
  0x3c   : > { %454 = vmatprep.subr.bf16.mxu0 %v513_v4 }
  0x43   : > { %455 = vmatpush3.bf16.xpose.msra.mxu0 %v514_v5 }
  0x44   : > { %456 = vmatprep.subr.bf16.mxu0 %v515_v6 }
  0x4b   : > { %457 = vmatpush3.bf16.xpose.msra.mxu0 %v516_v8 }
  0x4c   : > { %458 = vmatprep.subr.bf16.mxu0 %v517_v9 }
  0x53   : > { %459 = vmatpush3.bf16.xpose.msra.mxu0 %v518_v10 }
  0x54   : > { %460 = vmatprep.subr.bf16.mxu0 %v519_v11 }
  0x5b   : > { %461 = vmatpush3.bf16.xpose.msra.mxu0 %v520_v12 }
  0x5c   : > { %462 = vmatprep.subr.bf16.mxu0 %v521_v13 }
  0x63   : > { %463 = vmatpush3.bf16.xpose.msra.mxu0 %v522_v14 }
  0x64   : > { %464 = vmatprep.subr.bf16.mxu0 %v523_v15 }
  0x6b   : > { %465 = vmatpush3.bf16.xpose.msra.mxu0 %v524_v16 }
  0x72   : > { %467 = vmatmul.mubr.bf16.vlgmr.msra.gmra.mrb[0].mxu0 %v167_v7 }
 0x145   : > { %v330_v17 = vpop.f32.mrb[0].mxu0 }
 0x146   : > { %v445_v18 = vmul.f32 -1.442695, %v330_v17  ;;  %v332_v19 = vpop.f32.mrb[1].mxu0 }
 0x147   : > { %v446_v20 = vmul.f32 -1.442695, %v332_v19  ;;  %v334_v21 = vpop.f32.mrb[2].mxu0 }
 0x148   : > { %525 = vpow2.f32 %v445_v18  ;;  %v335_v22 = vpop.f32.mrb[3].mxu0 }
 0x149   : > { %527 = vpow2.f32 %v446_v20 }
 0x152   : > { %v526_v23 = vpop.eup %525 }
 0x153   : > { %v528_v24 = vpop.eup %527  ;;  %v343_v25 = vadd.f32 1.0, %v526_v23 }
 0x154   : > { %v344_v26 = vadd.f32 1.0, %v528_v24 }
 0x155   : > { %529 = vrcp.f32 %v343_v25 }
 0x156   : > { %531 = vrcp.f32 %v344_v26 }
 0x15f   : > { %v530_v27 = vpop.eup %529 }
 0x160   : > { %v532_v28 = vpop.eup %531  ;;  %349 = vst [vmem:[%s164_s29] sm:$0xff] %v530_v27 }
 0x161   : > { %350 = vst [vmem:[%s164_s29 + $0x8] sm:$0xff] %v532_v28 }
 0x162 PF: > { %p12_p8 = scmp.ge.s32.totalorder %s637_s14, 4   ;;  %s751_s9 = smov %s589_s10 }
 0x163   : > { %s752_s10 = smov %s593_s11  ;;  %s753_s11 = smov %s647_s17 }
 0x164   : > { %s754_s12 = smov %s637_s14  ;;  %14 = sbr.rel (!%p12_p8) target bundleno = 3 (0x3), region = 68 }
 0x16b   :  { %373 = vsyncpa [#allocation3], 1 }
 0x16c   :  { %375 = vsyncpa [#allocation3 + $0x1], 1 }

</bundles_post_ra>
